<compile_context>
chip_gen: v7x
topology: tpu7x:2x2x1
jax: 0.10.0
libtpu: 0.0.40
codegen_flags: <defaults>
</compile_context>

<pallas_src>
import functools

import jax
import jax.numpy as jnp
from jax.experimental import pallas as pl
from jax.experimental.pallas import tpu as pltpu

LANE = 128  # TPU vreg lane width


def _round_up(n, m):
    return ((n + m - 1) // m) * m


def _syslog_fwd_kernel(x_ref, w1_ref, b1_ref, w2_ref, b2_ref, out_ref, *, num_classes):
    """Fused MLP forward for one batch tile: linear -> relu -> linear -> log_softmax."""
    x = x_ref[...]                                   # (TB, F)        f32
    w1 = w1_ref[...]                                 # (F, H_pad)     f32
    b1 = b1_ref[...]                                 # (1, H_pad)     f32
    w2 = w2_ref[...]                                 # (H_pad, C_pad) f32
    b2 = b2_ref[...]                                 # (1, C_pad)     f32

    # Linear 1 + ReLU (f32 end-to-end for parity with the PyTorch f32 model).
    h = jnp.dot(x, w1, preferred_element_type=jnp.float32) + b1
    h = jnp.maximum(h, 0.0)

    # Linear 2 (padded hidden lanes are exactly zero -> no contribution).
    logits = jnp.dot(h, w2, preferred_element_type=jnp.float32) + b2

    # Exclude padded class lanes from the log-softmax reductions.
    lane = jax.lax.broadcasted_iota(jnp.int32, logits.shape, 1)
    logits = jnp.where(lane < num_classes, logits, jnp.float32(-1e30))

    # LogSoftmax over dim=1 (numerically stable); store only the valid class lanes.
    m = jnp.max(logits, axis=1, keepdims=True)
    shifted = logits - m
    lse = jnp.log(jnp.sum(jnp.exp(shifted), axis=1, keepdims=True))
    out_ref[...] = (shifted - lse)[:, :num_classes]


@functools.partial(jax.jit, static_argnames=("num_classes", "block_rows"))
def syslog_forward(x, w1p, b1p, w2p, b2p, *, num_classes, block_rows=2048):
    """x: (B, F) f32; padded params from pad_params(). Returns (B, num_classes) f32."""
    b, f = x.shape
    h_pad = w1p.shape[1]
    c_pad = w2p.shape[1]

    # Batch tile: multiple of 8 sublanes, capped by block_rows; ragged last tile is
    # handled by the cdiv grid (no padded copy of x, no wasted full-tile rounding).
    tb = _round_up(min(block_rows, _round_up(b, 8)), 8)
    grid = (pl.cdiv(b, tb),)

    kernel = functools.partial(_syslog_fwd_kernel, num_classes=num_classes)

    return pl.pallas_call(
        kernel,
        out_shape=jax.ShapeDtypeStruct((b, num_classes), jnp.float32),
        grid=grid,
        in_specs=[
            pl.BlockSpec((tb, f), lambda i: (i, 0)),         # x: streamed batch tiles
            pl.BlockSpec((f, h_pad), lambda i: (0, 0)),      # w1: resident in VMEM
            pl.BlockSpec((1, h_pad), lambda i: (0, 0)),      # b1: resident
            pl.BlockSpec((h_pad, c_pad), lambda i: (0, 0)),  # w2: resident
            pl.BlockSpec((1, c_pad), lambda i: (0, 0)),      # b2: resident
        ],
        out_specs=pl.BlockSpec((tb, num_classes), lambda i: (i, 0)),  # last dim == full dim
        compiler_params=pltpu.CompilerParams(
            dimension_semantics=("parallel",)),              # megacore sharding on v7x
    )(x, w1p, b1p, w2p, b2p)


def pad_params(w1, b1, w2, b2):
    """Zero-pad hidden/class dims to 128 lanes (done once); keep f32 for exact parity."""
    f, h = w1.shape
    _, c = w2.shape
    h_pad = _round_up(h, LANE)
    c_pad = _round_up(c, LANE)
    w1p = jnp.zeros((f, h_pad), jnp.float32).at[:, :h].set(w1.astype(jnp.float32))
    b1p = jnp.zeros((1, h_pad), jnp.float32).at[:, :h].set(b1.astype(jnp.float32))
    w2p = jnp.zeros((h_pad, c_pad), jnp.float32).at[:h, :c].set(w2.astype(jnp.float32))
    b2p = jnp.zeros((1, c_pad), jnp.float32).at[:, :c].set(b2.astype(jnp.float32))
    return w1p, b1p, w2p, b2p


def init_params(key, num_features, hidden, num_classes):
    """Deterministic init mirroring torch.nn.Linear's default U(-1/sqrt(in), 1/sqrt(in))."""
    k1, k2, k3, k4 = jax.random.split(key, 4)
    bound1 = 1.0 / jnp.sqrt(float(num_features))
    bound2 = 1.0 / jnp.sqrt(float(hidden))
    # Stored as [in, out] (transpose of torch's [out, in]).
    w1 = jax.random.uniform(k1, (num_features, hidden), jnp.float32, -bound1, bound1)
    b1 = jax.random.uniform(k2, (1, hidden), jnp.float32, -bound1, bound1)
    w2 = jax.random.uniform(k3, (hidden, num_classes), jnp.float32, -bound2, bound2)
    b2 = jax.random.uniform(k4, (1, num_classes), jnp.float32, -bound2, bound2)
    return w1, b1, w2, b2


def reference_forward(x, w1, b1, w2, b2):
    """Pure-JAX f32 reference (HIGHEST precision so the reference itself is fp32-accurate)."""
    h = jnp.dot(x, w1, precision=jax.lax.Precision.HIGHEST) + b1
    h = jnp.maximum(h, 0.0)
    logits = jnp.dot(h, w2, precision=jax.lax.Precision.HIGHEST) + b2
    return jax.nn.log_softmax(logits, axis=1)


if __name__ == "__main__":
    NUM_FEATURES = 32
    HIDDEN = 10
    NUM_CLASSES = 4

    key = jax.random.PRNGKey(0)
    kx, kp, kx2 = jax.random.split(key, 3)
    w1, b1, w2, b2 = init_params(kp, NUM_FEATURES, HIDDEN, NUM_CLASSES)
    w1p, b1p, w2p, b2p = pad_params(w1, b1, w2, b2)

    # Tolerance is loose enough to absorb MXU pass-count differences between the Pallas
    # f32 matmul path and the HIGHEST-precision XLA reference, but tight enough to catch
    # any semantic error (missing bias / relu / wrong softmax axis are all >> 1e-2).
    ATOL = RTOL = 1e-2

    # Case 1: sublane-aligned batch.
    BATCH = 8
    x = jax.random.normal(kx, (BATCH, NUM_FEATURES), jnp.float32)
    out = jax.block_until_ready(
        syslog_forward(x, w1p, b1p, w2p, b2p, num_classes=NUM_CLASSES))
    ref = reference_forward(x, w1, b1, w2, b2)
    assert out.shape == (BATCH, NUM_CLASSES)
    assert jnp.allclose(out, ref, atol=ATOL, rtol=RTOL), "mismatch vs reference (aligned batch)"

    # Case 2: ragged batch (exercises the partial last tile / no-pad path).
    BATCH2 = 13
    x2 = jax.random.normal(kx2, (BATCH2, NUM_FEATURES), jnp.float32)
    out2 = jax.block_until_ready(
        syslog_forward(x2, w1p, b1p, w2p, b2p, num_classes=NUM_CLASSES))
    ref2 = reference_forward(x2, w1, b1, w2, b2)
    assert out2.shape == (BATCH2, NUM_CLASSES)
    assert jnp.allclose(out2, ref2, atol=ATOL, rtol=RTOL), "mismatch vs reference (ragged batch)"

    print("KERNEL_OK")
</pallas_src>

<mosaic_0001>
module attributes {stable_mosaic.version = 11 : i64} {
  func.func @_syslog_fwd_kernel(%arg0: i32, %arg1: memref<8x32xf32, #tpu.memory_space<vmem>>, %arg2: memref<32x128xf32, #tpu.memory_space<vmem>>, %arg3: memref<1x128xf32, #tpu.memory_space<vmem>>, %arg4: memref<128x128xf32, #tpu.memory_space<vmem>>, %arg5: memref<1x128xf32, #tpu.memory_space<vmem>>, %arg6: memref<8x4xf32, #tpu.memory_space<vmem>>) attributes {dimension_semantics = [#tpu.dimension_semantics<parallel>], iteration_bounds = array<i64: 1>, scalar_prefetch = 0 : i64, scratch_operands = 0 : i64, tpu.core_type = #tpu.core_type<tc>, window_params = [{transform_indices = @transform_0, window_bounds = array<i64: 8, 32>}, {pipeline_mode = #tpu.pipeline_mode<synchronous>, transform_indices = @transform_1, window_bounds = array<i64: 32, 128>}, {pipeline_mode = #tpu.pipeline_mode<synchronous>, transform_indices = @transform_2, window_bounds = array<i64: 1, 128>}, {pipeline_mode = #tpu.pipeline_mode<synchronous>, transform_indices = @transform_3, window_bounds = array<i64: 128, 128>}, {pipeline_mode = #tpu.pipeline_mode<synchronous>, transform_indices = @transform_4, window_bounds = array<i64: 1, 128>}, {transform_indices = @transform_5, window_bounds = array<i64: 8, 4>}]} {
    %c0 = arith.constant 0 : index
    %c0_0 = arith.constant 0 : index
    %0 = vector.load %arg1[%c0, %c0_0] : memref<8x32xf32, #tpu.memory_space<vmem>>, vector<8x32xf32>
    %c0_1 = arith.constant 0 : index
    %c0_2 = arith.constant 0 : index
    %1 = vector.load %arg2[%c0_1, %c0_2] : memref<32x128xf32, #tpu.memory_space<vmem>>, vector<32x128xf32>
    %c0_3 = arith.constant 0 : index
    %c0_4 = arith.constant 0 : index
    %2 = vector.load %arg3[%c0_3, %c0_4] : memref<1x128xf32, #tpu.memory_space<vmem>>, vector<1x128xf32>
    %c0_5 = arith.constant 0 : index
    %c0_6 = arith.constant 0 : index
    %3 = vector.load %arg4[%c0_5, %c0_6] : memref<128x128xf32, #tpu.memory_space<vmem>>, vector<128x128xf32>
    %c0_7 = arith.constant 0 : index
    %c0_8 = arith.constant 0 : index
    %4 = vector.load %arg5[%c0_7, %c0_8] : memref<1x128xf32, #tpu.memory_space<vmem>>, vector<1x128xf32>
    %cst = arith.constant dense<0.000000e+00> : vector<8x128xf32>
    %5 = tpu.matmul %0, %1, %cst {dimension_numbers = #tpu.dot_dimension_numbers<[1], [0], [0], [1], [0, 0, 1, 1], [], []>} : vector<8x32xf32>, vector<32x128xf32>, vector<8x128xf32> -> vector<8x128xf32>
    %6 = vector.broadcast %2 : vector<1x128xf32> to vector<8x128xf32>
    %7 = arith.addf %5, %6 : vector<8x128xf32>
    %cst_9 = arith.constant 0.000000e+00 : f32
    %8 = vector.broadcast %cst_9 : f32 to vector<8x128xf32>
    %9 = arith.maximumf %7, %8 : vector<8x128xf32>
    %cst_10 = arith.constant dense<0.000000e+00> : vector<8x128xf32>
    %10 = tpu.matmul %9, %3, %cst_10 {dimension_numbers = #tpu.dot_dimension_numbers<[1], [0], [0], [1], [0, 0, 1, 1], [], []>} : vector<8x128xf32>, vector<128x128xf32>, vector<8x128xf32> -> vector<8x128xf32>
    %11 = vector.broadcast %4 : vector<1x128xf32> to vector<8x128xf32>
    %12 = arith.addf %10, %11 : vector<8x128xf32>
    %13 = tpu.iota {dimensions = array<i32: 1>} : vector<8x128xi32>
    %c4_i32 = arith.constant 4 : i32
    %14 = vector.broadcast %c4_i32 : i32 to vector<8x128xi32>
    %15 = arith.cmpi slt, %13, %14 : vector<8x128xi32>
    %cst_11 = arith.constant -1.000000e+30 : f32
    %16 = vector.broadcast %cst_11 : f32 to vector<8x128xf32>
    %17 = arith.select %15, %12, %16 : vector<8x128xi1>, vector<8x128xf32>
    %cst_12 = arith.constant dense<0xFF800000> : vector<8xf32>
    %18 = vector.multi_reduction <maximumf>, %17, %cst_12 [1] : vector<8x128xf32> to vector<8xf32>
    %19 = vector.shape_cast %18 : vector<8xf32> to vector<8x1xf32>
    %20 = vector.broadcast %19 : vector<8x1xf32> to vector<8x128xf32>
    %21 = arith.subf %17, %20 : vector<8x128xf32>
    %22 = math.exp %21 : vector<8x128xf32>
    %cst_13 = arith.constant dense<0.000000e+00> : vector<8xf32>
    %23 = vector.multi_reduction <add>, %22, %cst_13 [1] : vector<8x128xf32> to vector<8xf32>
    %24 = vector.shape_cast %23 : vector<8xf32> to vector<8x1xf32>
    %25 = math.log %24 : vector<8x1xf32>
    %26 = vector.broadcast %25 : vector<8x1xf32> to vector<8x128xf32>
    %27 = arith.subf %21, %26 : vector<8x128xf32>
    %28 = vector.extract_strided_slice %27 {offsets = [0, 0], sizes = [8, 4], strides = [1, 1]} : vector<8x128xf32> to vector<8x4xf32>
    %c0_14 = arith.constant 0 : index
    %c0_15 = arith.constant 0 : index
    %29 = vector.load %arg6[%c0_14, %c0_15] : memref<8x4xf32, #tpu.memory_space<vmem>>, vector<8x4xf32>
    tpu.vector_store %arg6[%c0_14, %c0_15], %28 {strides = array<i32>} : memref<8x4xf32, #tpu.memory_space<vmem>>, vector<8x4xf32>,
    return
  }
  func.func @transform_0(%arg0: i32) -> (i32, i32) {
    %c0_i32 = arith.constant 0 : i32
    %c0_i32_0 = arith.constant 0 : i32
    return %arg0, %c0_i32 : i32, i32
  }
  func.func @transform_1(%arg0: i32) -> (i32, i32) {
    %c0_i32 = arith.constant 0 : i32
    %c0_i32_0 = arith.constant 0 : i32
    %c0_i32_1 = arith.constant 0 : i32
    return %c0_i32, %c0_i32_0 : i32, i32
  }
  func.func @transform_2(%arg0: i32) -> (i32, i32) {
    %c0_i32 = arith.constant 0 : i32
    %c0_i32_0 = arith.constant 0 : i32
    %c0_i32_1 = arith.constant 0 : i32
    return %c0_i32, %c0_i32_0 : i32, i32
  }
  func.func @transform_3(%arg0: i32) -> (i32, i32) {
    %c0_i32 = arith.constant 0 : i32
    %c0_i32_0 = arith.constant 0 : i32
    %c0_i32_1 = arith.constant 0 : i32
    return %c0_i32, %c0_i32_0 : i32, i32
  }
  func.func @transform_4(%arg0: i32) -> (i32, i32) {
    %c0_i32 = arith.constant 0 : i32
    %c0_i32_0 = arith.constant 0 : i32
    %c0_i32_1 = arith.constant 0 : i32
    return %c0_i32, %c0_i32_0 : i32, i32
  }
  func.func @transform_5(%arg0: i32) -> (i32, i32) {
    %c0_i32 = arith.constant 0 : i32
    %c0_i32_0 = arith.constant 0 : i32
    return %arg0, %c0_i32 : i32, i32
  }
}

</mosaic_0001>

<bundles_post_ra>
// kernel: syslog_forward.1
= control target key start
LH: loop header
LB: loop body
LE: loop exit
PB: predicated region body
PF: predicated region fallthrough
CT: control target
= control target key end

     0   :  { %10 = vsyncpa [#allocation3], 0  ;;  %s533_s0 = inlined_call_operand.hbm [shape: f32[8,32], index: 0, kind: input, shape index: {}]   ;;  %s534_s1 = inlined_call_operand.hbm [shape: f32[32,128], index: 1, kind: input, shape index: {}]   ;;  %s535_s2 = inlined_call_operand.vmem [shape: f32[1,128], index: 2, kind: input, shape index: {}]   ;;  %s536_s3 = inlined_call_operand.hbm [shape: f32[128,128], index: 3, kind: input, shape index: {}]   ;;  %s537_s4 = inlined_call_operand.vmem [shape: f32[1,128], index: 4, kind: input, shape index: {}]   ;;  %s538_s5 = inlined_call_operand.vmem [shape: f32[8,4], index: 5, kind: output, shape index: {}]  }
   0x1   :  { %11 = vsyncpa [#allocation5], 0  ;;  %s444_s18 = smov [#allocation4]   ;;  %s374_s22 = scalar_lea.hbm %s534_s1, 512 }
   0x2   :  { %s27_s19 = sshll.u32 %s444_s18, 4  ;;  %p375_p0 = scmp.ne.s32.totalorder %s534_s1, %s374_s22  ;;  %s28_s19 = int_to_ptr.vmem [resolvable:$true] %s27_s19 }
   0x3   :  { %p378_p1 = scmp.lt.u32.totalorder %s374_s22, %s534_s1 }
   0x5   :  { %p380_p2 = pnand %p378_p1, %p375_p0 }
   0x7   :  { %383 = shalt.err (!%p380_p2)
}
   0x8   :  { %s384_s27 = scalar_lea.vmem %s28_s19, 512  ;;  %p389_p4 = scmp.lt.s32.totalorder %s28_s19, %s28_s19 }
   0x9   :  { %p385_p3 = scmp.ne.s32.totalorder %s28_s19, %s384_s27  ;;  %p390_p5 = scmp.lt.s32.totalorder %s384_s27, %s384_s27 }
   0xb   :  { %p391_p6 = por %p390_p5, %p389_p4 }
   0xd   :  { %p392_p7 = pnand %p391_p6, %p385_p3 }
   0xf   :  { %395 = shalt.err (!%p392_p7)
}
  0x10   :  { %s445_s28 = smov 128   ;;  %s446_s29 = smov 8  }
  0x11   :  { %33 = dma.hbm_to_vmem [thread:$0]  %s534_s1, 512, %s28_s19, [#allocation5], %s445_s28, %s445_s28, %s446_s29  }
  0x12   :  { %s447_s7 = smov [#allocation2]   ;;  %s448_s9 = smov [#allocation6]  }
  0x13   :  { %s18_s8 = sshll.u32 %s447_s7, 4  ;;  %s41_s10 = sshll.u32 %s448_s9, 4  ;;  %s19_s8 = int_to_ptr.vmem [resolvable:$true] %s18_s8  ;;  %s42_s10 = int_to_ptr.vmem [resolvable:$true] %s41_s10 }
  0x14   :  { %s396_s13 = scalar_lea.hbm %s533_s0, 128 }
  0x15   :  { %p397_p8 = scmp.ne.s32.totalorder %s533_s0, %s396_s13  ;;  %p400_p9 = scmp.lt.u32.totalorder %s396_s13, %s533_s0 }
  0x17   :  { %p402_p10 = pnand %p400_p9, %p397_p8 }
  0x19   :  { %405 = shalt.err (!%p402_p10)
}
  0x1a   :  { %s406_s1 = scalar_lea.vmem %s19_s8, 128  ;;  %p411_p12 = scmp.lt.s32.totalorder %s19_s8, %s19_s8 }
  0x1b   :  { %p407_p11 = scmp.ne.s32.totalorder %s19_s8, %s406_s1  ;;  %p412_p13 = scmp.lt.s32.totalorder %s406_s1, %s406_s1 }
  0x1d   :  { %p413_p0 = por %p412_p13, %p411_p12 }
  0x1f   :  { %p414_p1 = pnand %p413_p0, %p407_p11 }
  0x21   :  { %417 = shalt.err (!%p414_p1)
}
  0x22   :  { %21 = dma.hbm_to_vmem [thread:$0]  %s533_s0, 128, %s19_s8, [#allocation3]  }
  0x23   :  { %s418_s22 = scalar_lea.hbm %s536_s3, 2048 }
  0x24   :  { %p419_p2 = scmp.ne.s32.totalorder %s536_s3, %s418_s22  ;;  %p422_p3 = scmp.lt.u32.totalorder %s418_s22, %s536_s3 }
  0x26   :  { %p424_p4 = pnand %p422_p3, %p419_p2 }
  0x28   :  { %427 = shalt.err (!%p424_p4)
}
  0x29   :  { %s428_s27 = scalar_lea.vmem %s42_s10, 2048  ;;  %p433_p6 = scmp.lt.s32.totalorder %s42_s10, %s42_s10 }
  0x2a   :  { %p429_p5 = scmp.ne.s32.totalorder %s42_s10, %s428_s27  ;;  %p434_p7 = scmp.lt.s32.totalorder %s428_s27, %s428_s27 }
  0x2c   :  { %p435_p8 = por %p434_p7, %p433_p6 }
  0x2e   :  { %p436_p9 = pnand %p435_p8, %p429_p5 }
  0x30   :  { %439 = shalt.err (!%p436_p9)
}
  0x31   :  { %47 = dma.hbm_to_vmem [thread:$0]  %s536_s3, 2048, %s42_s10, [#allocation5], %s445_s28, %s445_s28, %s446_s29  }
  0x32   :  { %440 = dma.done.wait [#allocation3], 128  }
  0x33   :  { %441 = vsyncadd [#allocation3], 4294967168 }
  0x34   :  { %442 = dma.done.wait [#allocation5], 2560  }
  0x35   :  { %443 = vsyncadd [#allocation5], 4294964736  ;;  %v449_v0 = vmov 0.0|0.0   ;;  %vm450_vm0 = vmmov 0   ;;  %v451_v1 = vmov 0.0   ;;  %v60_v2 = vld [vmem:[#allocation4] sm:$0xff]  ;;  %v239_v38 = vlaneseq }
  0x36   :  { %332 = vmatprep.subr.bf16.mxu0 %v449_v0  ;;  %294 = vmatprep.mubr.msk.f32.mxu0 %vm450_vm0, %v451_v1  ;;  %v61_v3 = vld [vmem:[#allocation4 + $0x8] sm:$0xff]  ;;  %v62_v4 = vld [vmem:[#allocation4 + $0x10] sm:$0xff]  ;;  %v63_v6 = vld [vmem:[#allocation4 + $0x18] sm:$0xff]  ;;  %vm88_vm1 = vcmask 261120   ;;  %vm253_vm3 = vcmask 31744  }
  0x37   :  { %338 = vmatprep.subr.bf16.mxu1 %v449_v0  ;;  %329 = vmatprep.mubr.msk.f32.mxu1 %vm450_vm0, %v451_v1  ;;  %v333_v5 = vpack.c.bf16 %v61_v3, %v60_v2  ;;  %v65_v7 = vld [vmem:[#allocation6] sm:$0xff]  ;;  %v66_v8 = vld [vmem:[#allocation6 + $0x8] sm:$0xff]  ;;  %v67_v9 = vld [vmem:[#allocation6 + $0x10] sm:$0xff]  ;;  %v336_v11 = vpack.c.bf16 %v63_v6, %v62_v4  ;;  %v240_v39 = vand.u32 127, %v239_v38 }
  0x38   :  { %v68_v10 = vld [vmem:[#allocation6 + $0x18] sm:$0xff]  ;;  %v339_v12 = vpack.c.bf16 %v66_v8, %v65_v7  ;;  %v69_v14 = vld [vmem:[#allocation6 + $0x20] sm:$0xff]  ;;  %v70_v15 = vld [vmem:[#allocation6 + $0x28] sm:$0xff] }
  0x39   :  { %334 = vmatpush3.bf16.msra.mxu0 %v333_v5  ;;  %v342_v13 = vpack.c.bf16 %v68_v10, %v67_v9  ;;  %v59_v16 = vld [vmem:[#allocation2] sm:$0xff]  ;;  %v345_v17 = vpack.c.bf16 %v70_v15, %v69_v14  ;;  %v71_v18 = vld [vmem:[#allocation6 + $0x30] sm:$0xff]  ;;  %v73_v21 = vld [vmem:[#allocation6 + $0x40] sm:$0xff]  ;;  %vm241_vm2 = vcmp.lt.s32.totalorder %v240_v39, 4 }
  0x3a   :  { %335 = vmatprep.subr.bf16.mxu0 %v449_v0  ;;  %340 = vmatpush3.bf16.msra.mxu1 %v339_v12  ;;  %v72_v19 = vld [vmem:[#allocation6 + $0x38] sm:$0xff]  ;;  %v74_v22 = vld [vmem:[#allocation6 + $0x48] sm:$0xff]  ;;  %v75_v24 = vld [vmem:[#allocation6 + $0x50] sm:$0xff] }
  0x3b   :  { %341 = vmatprep.subr.bf16.mxu1 %v449_v0  ;;  %v348_v20 = vpack.c.bf16 %v72_v19, %v71_v18  ;;  %v351_v23 = vpack.c.bf16 %v74_v22, %v73_v21  ;;  %v76_v25 = vld [vmem:[#allocation6 + $0x58] sm:$0xff]  ;;  %v77_v27 = vld [vmem:[#allocation6 + $0x60] sm:$0xff]  ;;  %v78_v28 = vld [vmem:[#allocation6 + $0x68] sm:$0xff] }
  0x3c   :  { %v354_v26 = vpack.c.bf16 %v76_v25, %v75_v24  ;;  %v357_v29 = vpack.c.bf16 %v78_v28, %v77_v27  ;;  %v79_v30 = vld [vmem:[#allocation6 + $0x70] sm:$0xff]  ;;  %v80_v31 = vld [vmem:[#allocation6 + $0x78] sm:$0xff] }
  0x3d   :  { %337 = vmatpush3.bf16.msra.mxu0 %v336_v11  ;;  %v360_v32 = vpack.c.bf16 %v80_v31, %v79_v30  ;;  %v261_v33 = vld [vmem:[%s535_s2] ss:$0 sm:$0xff] }
  0x3e   :  { %343 = vmatpush3.bf16.msra.mxu1 %v342_v13  ;;  %v263_v40 = vld [vmem:[%s537_s4] ss:$0 sm:$0xff] }
  0x3f   :  { %344 = vmatprep.subr.bf16.mxu1 %v449_v0 }
  0x40   :  { %295 = vmatmul.mubr.msk.f32.vlgmr.msra.gmra.mrb[0].mxu0 %vm88_vm1, %v59_v16 }
  0x42   :  { %346 = vmatpush3.bf16.msra.mxu1 %v345_v17 }
  0x43   :  { %347 = vmatprep.subr.bf16.mxu1 %v449_v0 }
  0x46   :  { %349 = vmatpush3.bf16.msra.mxu1 %v348_v20 }
  0x47   :  { %350 = vmatprep.subr.bf16.mxu1 %v449_v0 }
  0x4a   :  { %352 = vmatpush3.bf16.msra.mxu1 %v351_v23 }
  0x4b   :  { %353 = vmatprep.subr.bf16.mxu1 %v449_v0 }
  0x4e   :  { %355 = vmatpush3.bf16.msra.mxu1 %v354_v26 }
  0x4f   :  { %356 = vmatprep.subr.bf16.mxu1 %v449_v0 }
  0x52   :  { %358 = vmatpush3.bf16.msra.mxu1 %v357_v29 }
  0x53   :  { %359 = vmatprep.subr.bf16.mxu1 %v449_v0 }
  0x56   :  { %361 = vmatpush3.bf16.msra.mxu1 %v360_v32 }
 0x113   :  { %v158_v34 = vpop.f32.mrb[0].mxu0 }
 0x114   :  { %v159_v35 = vadd.f32 %v261_v33, %v158_v34  ;;  %v296_v36 = vpop.f32.mrb[1].mxu0 }
 0x116   :  { %v162_v37 = vmax.f32 %v159_v35, 0.0 }
 0x118   :  { %330 = vmatmul.mubr.f32.vlgmr.msra.gmra.mrb[0].mxu1 %v162_v37 }
 0x1eb   :  { %v235_v41 = vpop.f32.mrb[0].mxu1 }
 0x1ec   :  { %v236_v42 = vadd.f32 %v263_v40, %v235_v41  ;;  %v331_v43 = vpop.f32.mrb[1].mxu1 }
 0x1ee   :  { %v242_v44 = vsel %vm241_vm2, %v236_v42, -1e+30 }
 0x1ef   :  { %243 = vmax.xlane.f32.xlu0 %v242_v44 }
 0x27c   :  { %v244_v45 = vpop.xlane.xlu0 %243 }
 0x27d   :  { %v245_v46 = vsub.f32 %v242_v44, %v244_v45 }
 0x27f   :  { %v246_v47 = vmul.f32 1.442695, %v245_v46 }
 0x281   :  { %370 = vpow2.f32 %v246_v47 }
 0x28b   :  { %v371_v48 = vpop.eup %370 }
 0x28c   :  { %248 = vadd.xlane.f32.xlu0 %v371_v48 }
 0x319   :  { %v249_v49 = vpop.xlane.xlu0 %248 }
 0x31a   :  { %372 = vlog2.f32 %v249_v49 }
 0x324   :  { %v373_v50 = vpop.eup %372 }
 0x325   :  { %v251_v51 = vmul.f32 0.6931472, %v373_v50 }
 0x327   :  { %v252_v52 = vsub.f32 %v245_v46, %v251_v51 }
 0x329   :  { %254 = vst.msk [vmem:[%s538_s5] sm:$0xff] %vm253_vm3, %v252_v52 }
 0x32a   :  { %259 = vsyncpa [#allocation3], 1 }
 0x32b   :  { %260 = vsyncpa [#allocation5], 1 }

</bundles_post_ra>
